<compile_context>
chip_gen: v5e
topology: v5e:2x2
jax: 0.10.0
libtpu: 0.0.40
codegen_flags: <defaults>
</compile_context>

<pallas_src>
import jax
import jax.numpy as jnp
from jax import lax
from jax.experimental import pallas as pl
from jax.experimental.pallas import tpu as pltpu


WEIGHT_DTYPE = jnp.bfloat16            # MXU operand dtype; accumulation is f32.
_VMEM_LIMIT = 48 * 1024 * 1024         # below physical VMEM on v5e/v6e/v7x.


# ----------------------------------------------------------------------------
# Tiling helpers.
# ----------------------------------------------------------------------------
def _choose_rows(n, max_tile=512):
    """Pad row count to a TPU-friendly size and pick the largest row tile."""
    n_pad = ((n + 7) // 8) * 8
    if n_pad >= 256:
        n_pad = ((n_pad + 127) // 128) * 128
    tile = 8
    for t in (max_tile, 256, 128, 64, 32, 16, 8):
        if t <= n_pad and n_pad % t == 0:
            tile = t
            break
    return n_pad, tile


def _choose_cols(v, max_tile=2048):
    """Pad vocab to a multiple of 128 and pick the largest lane tile."""
    v_pad = ((v + 127) // 128) * 128
    tile = 128
    for t in (max_tile, 1024, 512, 256, 128):
        if t <= v_pad and v_pad % t == 0:
            tile = t
            break
    return v_pad, tile


def _time_tile(T, cap=32):
    """Largest divisor of T not exceeding `cap` (time-chunk length)."""
    if T <= cap:
        return T
    for t in range(cap, 0, -1):
        if T % t == 0:
            return t
    return 1


def _batch_tile(B):
    """Split batch across 2 blocks (v7x megacore) only when bf16-tile-safe."""
    if B % 32 == 0:
        return B // 2
    return B


# ----------------------------------------------------------------------------
# Hoisted input projection:  g0 = x @ W_ih0^T + (b_ih0 + b_hh0)   (bf16 out)
# ----------------------------------------------------------------------------
def _proj_kernel(x_ref, w_ref, b_ref, o_ref):
    acc = jnp.dot(x_ref[...].astype(w_ref.dtype), w_ref[...],
                  preferred_element_type=jnp.float32)
    o_ref[...] = (acc + b_ref[...]).astype(o_ref.dtype)


def input_projection(x, w_t, b):
    """x: (N, I) bf16, w_t: (I, 4H) bf16, b: (1, 4H) f32 -> (N, 4H) bf16."""
    N, I = x.shape
    G = w_t.shape[1]
    N_pad, tn = _choose_rows(N, max_tile=512)
    if N_pad != N:
        x = jnp.pad(x, ((0, N_pad - N), (0, 0)))
    out = pl.pallas_call(
        _proj_kernel,
        out_shape=jax.ShapeDtypeStruct((N_pad, G), WEIGHT_DTYPE),
        grid=(N_pad // tn,),
        in_specs=[
            pl.BlockSpec((tn, I), lambda i: (i, 0)),
            pl.BlockSpec((I, G), lambda i: (0, 0)),
            pl.BlockSpec((1, G), lambda i: (0, 0)),
        ],
        out_specs=pl.BlockSpec((tn, G), lambda i: (i, 0)),
        compiler_params=pltpu.CompilerParams(
            dimension_semantics=("parallel",),
            vmem_limit_bytes=_VMEM_LIMIT),
    )(x, w_t, b)
    return out[:N] if N_pad != N else out


# ----------------------------------------------------------------------------
# Fused multi-layer LSTM.
#   grid = (batch blocks ["parallel"], time chunks ["arbitrary"])
#   layer 0 consumes pre-projected g0; layers l>=1 use one stacked matmul
#   over concat([x_t, h_l]) with a (2H, 4H) weight.
#   (h, c) carried across time chunks in VMEM scratch.
# ----------------------------------------------------------------------------
def _make_fused_lstm_kernel(L, H, tt, unroll):
    def kernel(*refs):
        g0_ref = refs[0]                          # (tt, tb, 4H) bf16
        h0_ref = refs[1]                          # (L, tb, H)  f32
        c0_ref = refs[2]                          # (L, tb, H)  f32
        whh0_ref = refs[3]                        # (H, 4H)     bf16
        wstk_refs = refs[4:4 + (L - 1)]           # (2H, 4H)    bf16, l>=1
        b_refs = refs[4 + (L - 1):4 + 2 * (L - 1)]  # (1, 4H)   f32,  l>=1
        off = 4 + 2 * (L - 1)
        y_ref = refs[off]                         # (tt, tb, H) bf16
        hN_ref = refs[off + 1]                    # (L, tb, H)  f32
        cN_ref = refs[off + 2]                    # (L, tb, H)  f32
        h_sc = refs[off + 3]                      # (L, tb, H)  f32 scratch
        c_sc = refs[off + 4]                      # (L, tb, H)  f32 scratch

        @pl.when(pl.program_id(1) == 0)
        def _():
            h_sc[...] = h0_ref[...]
            c_sc[...] = c0_ref[...]

        def cell(gates, c_prev):
            # Gate columns permuted at prep time to [i, f, o, g].
            ifo = jax.nn.sigmoid(gates[:, :3 * H])
            g = jnp.tanh(gates[:, 3 * H:])
            i = ifo[:, :H]
            f = ifo[:, H:2 * H]
            o = ifo[:, 2 * H:]
            c = f * c_prev + i * g
            h = o * jnp.tanh(c)
            return h, c

        def step(t, carry):
            hs = list(carry[:L])
            cs = list(carry[L:])
            # Layer 0: input projection hoisted; only the recurrent matmul.
            gates = (g0_ref[t].astype(jnp.float32)
                     + jnp.dot(hs[0].astype(WEIGHT_DTYPE), whh0_ref[...],
                               preferred_element_type=jnp.float32))
            h, c = cell(gates, cs[0])
            hs[0], cs[0] = h, c
            x_t = h
            for l in range(1, L):
                xh = jnp.concatenate([x_t, hs[l]], axis=-1).astype(WEIGHT_DTYPE)
                gates = (jnp.dot(xh, wstk_refs[l - 1][...],
                                 preferred_element_type=jnp.float32)
                         + b_refs[l - 1][...])
                h, c = cell(gates, cs[l])
                hs[l], cs[l] = h, c
                x_t = h
            y_ref[t] = x_t.astype(WEIGHT_DTYPE)
            return tuple(hs) + tuple(cs)

        init = (tuple(h_sc[l] for l in range(L))
                + tuple(c_sc[l] for l in range(L)))
        final = lax.fori_loop(0, tt, step, init, unroll=unroll)

        for l in range(L):
            h_sc[l] = final[l]
            c_sc[l] = final[L + l]

        # Write final hidden state exactly once (last time chunk).
        @pl.when(pl.program_id(1) == pl.num_programs(1) - 1)
        def _():
            hN_ref[...] = h_sc[...]
            cN_ref[...] = c_sc[...]

    return kernel


def fused_lstm(g0, h0, c0, whh0_t, w_stacked, b_rest):
    """g0: (T,B,4H) bf16 pre-projected layer-0 gates; h0/c0: (L,B,H) f32."""
    T, B, G = g0.shape
    H = G // 4
    L = h0.shape[0]
    tb = _batch_tile(B)
    tt = _time_tile(T)
    unroll = min(4, tt)
    kernel = _make_fused_lstm_kernel(L, H, tt, unroll)

    in_specs = [
        pl.BlockSpec((tt, tb, G), lambda b, t: (t, b, 0)),
        pl.BlockSpec((L, tb, H), lambda b, t: (0, b, 0)),
        pl.BlockSpec((L, tb, H), lambda b, t: (0, b, 0)),
        pl.BlockSpec((H, G), lambda b, t: (0, 0)),
    ]
    in_specs += [pl.BlockSpec((2 * H, G), lambda b, t: (0, 0))] * (L - 1)
    in_specs += [pl.BlockSpec((1, G), lambda b, t: (0, 0))] * (L - 1)
    out_specs = [
        pl.BlockSpec((tt, tb, H), lambda b, t: (t, b, 0)),
        pl.BlockSpec((L, tb, H), lambda b, t: (0, b, 0)),
        pl.BlockSpec((L, tb, H), lambda b, t: (0, b, 0)),
    ]
    out_shape = (
        jax.ShapeDtypeStruct((T, B, H), WEIGHT_DTYPE),   # layer-(L-1) outputs
        jax.ShapeDtypeStruct((L, B, H), jnp.float32),    # h_N
        jax.ShapeDtypeStruct((L, B, H), jnp.float32),    # c_N
    )
    scratch = [pltpu.VMEM((L, tb, H), jnp.float32),
               pltpu.VMEM((L, tb, H), jnp.float32)]

    return pl.pallas_call(
        kernel,
        out_shape=out_shape,
        grid_spec=pltpu.PrefetchScalarGridSpec(
            num_scalar_prefetch=0,
            grid=(B // tb, T // tt),
            in_specs=in_specs,
            out_specs=out_specs,
            scratch_shapes=scratch),
        compiler_params=pltpu.CompilerParams(
            dimension_semantics=("parallel", "arbitrary"),
            vmem_limit_bytes=_VMEM_LIMIT),
    )(g0, h0, c0, whh0_t, *w_stacked, *b_rest)


# ----------------------------------------------------------------------------
# Decoder: Linear + log_softmax with vocab tiling.
#   Pass 1: row-tiled x "parallel" x V-tiled "arbitrary" matmul with an online
#           logsumexp accumulator; writes logits and per-row lse.
#   Pass 2: tiled elementwise normalize  out = logits - lse.
# ----------------------------------------------------------------------------
def _logits_lse_kernel(x_ref, w_ref, b_ref, logits_ref, lse_ref, m_sc, l_sc):
    j = pl.program_id(1)

    @pl.when(j == 0)
    def _():
        m_sc[...] = jnp.full_like(m_sc, -jnp.inf)
        l_sc[...] = jnp.zeros_like(l_sc)

    logits = (jnp.dot(x_ref[...].astype(w_ref.dtype), w_ref[...],
                      preferred_element_type=jnp.float32) + b_ref[...])
    logits_ref[...] = logits

    m_prev = m_sc[...]
    m_new = jnp.maximum(m_prev, jnp.max(logits, axis=-1, keepdims=True))
    l_sc[...] = (l_sc[...] * jnp.exp(m_prev - m_new)
                 + jnp.sum(jnp.exp(logits - m_new), axis=-1, keepdims=True))
    m_sc[...] = m_new

    @pl.when(j == pl.num_programs(1) - 1)
    def _():
        lse_ref[...] = m_sc[...] + jnp.log(l_sc[...])


def _normalize_kernel(logits_ref, lse_ref, out_ref):
    out_ref[...] = logits_ref[...] - lse_ref[...]


def decode_log_softmax(x, dec_w_t, dec_b):
    """x: (N, H) bf16, dec_w_t: (H, V) bf16, dec_b: (1, V) f32 -> (N, V) f32."""
    N, H = x.shape
    V = dec_w_t.shape[1]
    N_pad, tn = _choose_rows(N, max_tile=256)
    V_pad, tv = _choose_cols(V)
    if N_pad != N:
        x = jnp.pad(x, ((0, N_pad - N), (0, 0)))
    if V_pad != V:
        dec_w_t = jnp.pad(dec_w_t, ((0, 0), (0, V_pad - V)))
        # Large negative (finite) bias so padded columns never affect the lse.
        dec_b = jnp.pad(dec_b, ((0, 0), (0, V_pad - V)), constant_values=-1e30)

    logits, lse = pl.pallas_call(
        _logits_lse_kernel,
        out_shape=(jax.ShapeDtypeStruct((N_pad, V_pad), jnp.float32),
                   jax.ShapeDtypeStruct((N_pad, 1), jnp.float32)),
        grid_spec=pltpu.PrefetchScalarGridSpec(
            num_scalar_prefetch=0,
            grid=(N_pad // tn, V_pad // tv),
            in_specs=[pl.BlockSpec((tn, H), lambda i, j: (i, 0)),
                      pl.BlockSpec((H, tv), lambda i, j: (0, j)),
                      pl.BlockSpec((1, tv), lambda i, j: (0, j))],
            out_specs=[pl.BlockSpec((tn, tv), lambda i, j: (i, j)),
                       pl.BlockSpec((tn, 1), lambda i, j: (i, 0))],
            scratch_shapes=[pltpu.VMEM((tn, 1), jnp.float32),
                            pltpu.VMEM((tn, 1), jnp.float32)]),
        compiler_params=pltpu.CompilerParams(
            dimension_semantics=("parallel", "arbitrary"),
            vmem_limit_bytes=_VMEM_LIMIT),
    )(x, dec_w_t, dec_b)

    out = pl.pallas_call(
        _normalize_kernel,
        out_shape=jax.ShapeDtypeStruct((N_pad, V_pad), jnp.float32),
        grid=(N_pad // tn, V_pad // tv),
        in_specs=[pl.BlockSpec((tn, tv), lambda i, j: (i, j)),
                  pl.BlockSpec((tn, 1), lambda i, j: (i, 0))],
        out_specs=pl.BlockSpec((tn, tv), lambda i, j: (i, j)),
        compiler_params=pltpu.CompilerParams(
            dimension_semantics=("parallel", "parallel"),
            vmem_limit_bytes=_VMEM_LIMIT),
    )(logits, lse)

    if N_pad != N or V_pad != V:
        out = out[:N, :V]
    return out


# ----------------------------------------------------------------------------
# Full model forward.
# ----------------------------------------------------------------------------
def rnn_model_forward(tokens, hidden, prep):
    """tokens: (T, B) int32;  hidden = (h0, c0) each (nlayers, B, nhid)."""
    T, B = tokens.shape
    h0, c0 = hidden
    H = h0.shape[-1]

    # Embedding lookup (gather) — plain-JAX glue (bf16 table).
    emb = jnp.take(prep["encoder"], tokens, axis=0)          # (T, B, ninp) bf16
    # dropout (eval mode) -> identity

    # Hoisted layer-0 input projection: one big matmul over all time steps.
    g0 = input_projection(emb.reshape(T * B, emb.shape[-1]),
                          prep["w_ih0_T"], prep["b0"])
    g0 = g0.reshape(T, B, 4 * H)

    # Fused multi-layer LSTM recurrence.
    y, hN, cN = fused_lstm(g0, h0, c0,
                           prep["w_hh0_T"], prep["w_stacked"], prep["b_rest"])
    # inter-layer / output dropout (eval mode) -> identity

    out = decode_log_softmax(y.reshape(T * B, H), prep["dec_wT"], prep["dec_b"])
    return out, (hN, cN)


# ----------------------------------------------------------------------------
# Deterministic parameter construction (matches __init__ / init_weights),
# then one-time host-side prep: gate permutation, weight transpose/stacking,
# bias folding, bf16 casting.
# ----------------------------------------------------------------------------
def make_params(key, ntoken, ninp, nhid, nlayers):
    initrange = 0.1
    ks = jax.random.split(key, 2 + nlayers)
    params = {}
    params["encoder"] = jax.random.uniform(
        ks[0], (ntoken, ninp), jnp.float32, -initrange, initrange)
    params["dec_w"] = jax.random.uniform(
        ks[1], (ntoken, nhid), jnp.float32, -initrange, initrange)
    params["dec_b"] = jnp.zeros((ntoken,), jnp.float32)

    stdv = 1.0 / (nhid ** 0.5)                     # PyTorch LSTM default init
    lstm = []
    for l in range(nlayers):
        in_dim = ninp if l == 0 else nhid
        kk = jax.random.split(ks[2 + l], 4)
        w_ih = jax.random.uniform(kk[0], (4 * nhid, in_dim), jnp.float32,
                                  -stdv, stdv)
        w_hh = jax.random.uniform(kk[1], (4 * nhid, nhid), jnp.float32,
                                  -stdv, stdv)
        b_ih = jax.random.uniform(kk[2], (4 * nhid,), jnp.float32, -stdv, stdv)
        b_hh = jax.random.uniform(kk[3], (4 * nhid,), jnp.float32, -stdv, stdv)
        lstm.append((w_ih, w_hh, b_ih, b_hh))
    params["lstm"] = lstm
    return params


def _permute_gates(x):
    """Last axis 4H in PyTorch order [i, f, g, o] -> kernel order [i, f, o, g]."""
    i, f, g, o = jnp.split(x, 4, axis=-1)
    return jnp.concatenate([i, f, o, g], axis=-1)


def prepare_params(params, w_dtype=WEIGHT_DTYPE):
    prep = {
        "encoder": params["encoder"].astype(w_dtype),
        "dec_wT": params["dec_w"].T.astype(w_dtype),            # (H, V)
        "dec_b": params["dec_b"].reshape(1, -1).astype(jnp.float32),
        "w_stacked": [], "b_rest": [],
    }
    for l, (w_ih, w_hh, b_ih, b_hh) in enumerate(params["lstm"]):
        b = _permute_gates((b_ih + b_hh).reshape(1, -1)).astype(jnp.float32)
        w_ih_t = _permute_gates(w_ih.T)                          # (in, 4H)
        w_hh_t = _permute_gates(w_hh.T)                          # (H, 4H)
        if l == 0:
            prep["w_ih0_T"] = w_ih_t.astype(w_dtype)             # (I, 4H)
            prep["b0"] = b
            prep["w_hh0_T"] = w_hh_t.astype(w_dtype)             # (H, 4H)
        else:
            prep["w_stacked"].append(
                jnp.concatenate([w_ih_t, w_hh_t], axis=0).astype(w_dtype))
            prep["b_rest"].append(b)
    return prep


# ----------------------------------------------------------------------------
# Pure-JAX reference (same bf16 operands / rounding points) for correctness.
# ----------------------------------------------------------------------------
def reference_forward(tokens, hidden, prep):
    T, B = tokens.shape
    h0, c0 = hidden
    L, _, H = h0.shape
    emb = jnp.take(prep["encoder"], tokens, axis=0)              # bf16
    g0 = (jnp.dot(emb.reshape(T * B, -1), prep["w_ih0_T"],
                  preferred_element_type=jnp.float32)
          + prep["b0"]).astype(WEIGHT_DTYPE).reshape(T, B, 4 * H)

    def cell(gates, c_prev):
        ifo = jax.nn.sigmoid(gates[:, :3 * H])
        g = jnp.tanh(gates[:, 3 * H:])
        i, f, o = ifo[:, :H], ifo[:, H:2 * H], ifo[:, 2 * H:]
        c = f * c_prev + i * g
        return o * jnp.tanh(c), c

    hs = [h0[l] for l in range(L)]
    cs = [c0[l] for l in range(L)]
    ys = []
    for t in range(T):
        gates = (g0[t].astype(jnp.float32)
                 + jnp.dot(hs[0].astype(WEIGHT_DTYPE), prep["w_hh0_T"],
                           preferred_element_type=jnp.float32))
        hs[0], cs[0] = cell(gates, cs[0])
        x_t = hs[0]
        for l in range(1, L):
            xh = jnp.concatenate([x_t, hs[l]], axis=-1).astype(WEIGHT_DTYPE)
            gates = (jnp.dot(xh, prep["w_stacked"][l - 1],
                             preferred_element_type=jnp.float32)
                     + prep["b_rest"][l - 1])
            hs[l], cs[l] = cell(gates, cs[l])
            x_t = hs[l]
        ys.append(x_t)
    y = jnp.stack(ys, 0).reshape(T * B, H).astype(WEIGHT_DTYPE)
    logits = (jnp.dot(y, prep["dec_wT"], preferred_element_type=jnp.float32)
              + prep["dec_b"])
    return (jax.nn.log_softmax(logits, axis=-1),
            (jnp.stack(hs, 0), jnp.stack(cs, 0)))


if __name__ == "__main__":
    # Small, TPU-tile-friendly shapes.
    ntoken, ninp, nhid, nlayers = 256, 128, 128, 2
    seq_len, batch = 8, 8

    key = jax.random.PRNGKey(0)
    k_par, k_tok = jax.random.split(key)
    params = make_params(k_par, ntoken, ninp, nhid, nlayers)
    prep = prepare_params(params)

    tokens = jax.random.randint(k_tok, (seq_len, batch), 0, ntoken,
                                dtype=jnp.int32)
    h0 = jnp.zeros((nlayers, batch, nhid), jnp.float32)   # init_hidden()
    c0 = jnp.zeros((nlayers, batch, nhid), jnp.float32)

    logprobs, (hN, cN) = rnn_model_forward(tokens, (h0, c0), prep)
    jax.block_until_ready((logprobs, hN, cN))

    assert logprobs.shape == (seq_len * batch, ntoken)
    assert hN.shape == (nlayers, batch, nhid)
    assert cN.shape == (nlayers, batch, nhid)
    # log_softmax rows should sum to ~1 in prob space.
    assert jnp.allclose(jnp.exp(logprobs).sum(-1), 1.0, atol=1e-4)

    # Compare against a pure-JAX reference using identical bf16 operands.
    ref_lp, (ref_h, ref_c) = reference_forward(tokens, (h0, c0), prep)
    assert jnp.allclose(logprobs, ref_lp, atol=2e-2)
    assert jnp.allclose(hN, ref_h, atol=2e-2)
    assert jnp.allclose(cN, ref_c, atol=2e-2)

    print("KERNEL_OK")
</pallas_src>

<mosaic_0001>
module attributes {stable_mosaic.version = 11 : i64} {
  func.func @_proj_kernel(%arg0: i32, %arg1: memref<64x128xbf16, #tpu.memory_space<vmem>>, %arg2: memref<128x512xbf16, #tpu.memory_space<vmem>>, %arg3: memref<1x512xf32, #tpu.memory_space<vmem>>, %arg4: memref<64x512xbf16, #tpu.memory_space<vmem>>) attributes {dimension_semantics = [#tpu.dimension_semantics<parallel>], iteration_bounds = array<i64: 1>, scalar_prefetch = 0 : i64, scratch_operands = 0 : i64, tpu.core_type = #tpu.core_type<tc>, window_params = [{transform_indices = @transform_0, window_bounds = array<i64: 64, 128>}, {pipeline_mode = #tpu.pipeline_mode<synchronous>, transform_indices = @transform_1, window_bounds = array<i64: 128, 512>}, {pipeline_mode = #tpu.pipeline_mode<synchronous>, transform_indices = @transform_2, window_bounds = array<i64: 1, 512>}, {transform_indices = @transform_3, window_bounds = array<i64: 64, 512>}]} {
    %c0 = arith.constant 0 : index
    %c0_0 = arith.constant 0 : index
    %0 = vector.load %arg1[%c0, %c0_0] : memref<64x128xbf16, #tpu.memory_space<vmem>>, vector<64x128xbf16>
    %c0_1 = arith.constant 0 : index
    %c0_2 = arith.constant 0 : index
    %1 = vector.load %arg2[%c0_1, %c0_2] : memref<128x512xbf16, #tpu.memory_space<vmem>>, vector<128x512xbf16>
    %cst = arith.constant dense<0.000000e+00> : vector<64x512xf32>
    %2 = tpu.matmul %0, %1, %cst {dimension_numbers = #tpu.dot_dimension_numbers<[1], [0], [0], [1], [0, 0, 1, 1], [], []>} : vector<64x128xbf16>, vector<128x512xbf16>, vector<64x512xf32> -> vector<64x512xf32>
    %c0_3 = arith.constant 0 : index
    %c0_4 = arith.constant 0 : index
    %3 = vector.load %arg3[%c0_3, %c0_4] : memref<1x512xf32, #tpu.memory_space<vmem>>, vector<1x512xf32>
    %4 = vector.broadcast %3 : vector<1x512xf32> to vector<64x512xf32>
    %5 = arith.addf %2, %4 : vector<64x512xf32>
    %6 = arith.truncf %5 : vector<64x512xf32> to vector<64x512xbf16>
    %c0_5 = arith.constant 0 : index
    %c0_6 = arith.constant 0 : index
    %7 = vector.load %arg4[%c0_5, %c0_6] : memref<64x512xbf16, #tpu.memory_space<vmem>>, vector<64x512xbf16>
    tpu.vector_store %arg4[%c0_5, %c0_6], %6 {strides = array<i32>} : memref<64x512xbf16, #tpu.memory_space<vmem>>, vector<64x512xbf16>,
    return
  }
  func.func @transform_0(%arg0: i32) -> (i32, i32) {
    %c0_i32 = arith.constant 0 : i32
    %c0_i32_0 = arith.constant 0 : i32
    return %arg0, %c0_i32 : i32, i32
  }
  func.func @transform_1(%arg0: i32) -> (i32, i32) {
    %c0_i32 = arith.constant 0 : i32
    %c0_i32_0 = arith.constant 0 : i32
    %c0_i32_1 = arith.constant 0 : i32
    return %c0_i32, %c0_i32_0 : i32, i32
  }
  func.func @transform_2(%arg0: i32) -> (i32, i32) {
    %c0_i32 = arith.constant 0 : i32
    %c0_i32_0 = arith.constant 0 : i32
    %c0_i32_1 = arith.constant 0 : i32
    return %c0_i32, %c0_i32_0 : i32, i32
  }
  func.func @transform_3(%arg0: i32) -> (i32, i32) {
    %c0_i32 = arith.constant 0 : i32
    %c0_i32_0 = arith.constant 0 : i32
    return %arg0, %c0_i32 : i32, i32
  }
}

</mosaic_0001>

<bundles_post_ra>
// kernel: tpu_custom_call.1
= control target key start
LH: loop header
LB: loop body
LE: loop exit
PB: predicated region body
PF: predicated region fallthrough
CT: control target
= control target key end

     0   :  { %8 = vsyncpa [#allocation3], 0  ;;  %s838_s0 = inlined_call_operand.hbm [shape: bf16[64,128], index: 0, kind: input, shape index: {}]   ;;  %s839_s1 = inlined_call_operand.hbm [shape: bf16[128,512], index: 1, kind: input, shape index: {}]   ;;  %s840_s2 = inlined_call_operand.hbm [shape: f32[1,512], index: 2, kind: input, shape index: {}]   ;;  %s841_s3 = inlined_call_operand.hbm [shape: bf16[64,512], index: 3, kind: output, shape index: {}]  }
   0x1   :  { %9 = vsyncpa [#allocation6], 0  ;;  %s28_s14 = sshll.u32 %s839_s1, 4  ;;  %s29_s14 = int_to_ptr.hbm [resolvable:$true] %s28_s14 }
   0x2   :  { %10 = vsyncpa [#allocation4], 0  ;;  %s752_s15 = smov [#allocation5]   ;;  %s15_s19 = sshll.u32 %s838_s0, 4  ;;  %s16_s19 = int_to_ptr.hbm [resolvable:$true] %s15_s19 }
   0x3   :  { %s30_s16 = sshll.u32 %s752_s15, 4  ;;  %s753_s20 = smov 256   ;;  %s31_s16 = int_to_ptr.vmem [resolvable:$true] %s30_s16 }
   0x4   :  { %s754_s21 = smov 16   ;;  %s755_s22 = smov [#allocation2]  }
   0x5   :  { %36 = dma.hbm_to_vmem [thread:$0]  %s29_s14, 4096, %s31_s16, [#allocation6], %s753_s20, %s753_s20, %s754_s21  }
   0x6   :  { %s17_s23 = sshll.u32 %s755_s22, 4  ;;  %s756_s1 = smov 64   ;;  %s18_s23 = int_to_ptr.vmem [resolvable:$true] %s17_s23 }
   0x7   :  { %s757_s24 = smov 4   ;;  %s42_s27 = sshll.u32 %s840_s2, 4  ;;  %s43_s27 = int_to_ptr.hbm [resolvable:$true] %s42_s27 }
   0x8   :  { %23 = dma.hbm_to_vmem [thread:$0]  %s16_s19, 512, %s18_s23, [#allocation3], %s756_s1, %s756_s1, %s757_s24  }
   0x9   :  { %s758_s28 = smov [#allocation7]  }
   0xa   :  { %s44_s0 = sshll.u32 %s758_s28, 4  ;;  %s45_s0 = int_to_ptr.vmem [resolvable:$true] %s44_s0 }
   0xb   :  { %47 = dma.hbm_to_vmem [thread:$0]  %s43_s27, 64, %s45_s0, [#allocation6]  }
   0xc   :  { %746 = dma.done.wait [#allocation3], 512  }
   0xd   :  { %747 = vsyncadd [#allocation3], 4294966784 }
   0xe   :  { %748 = dma.done.wait [#allocation6], 4160  }
   0xf   :  { %749 = vsyncadd [#allocation6], 4294963136  ;;  %v592_v0 = vld [vmem:[#allocation5 + $0xe0] sm:$0xf]  ;;  %v640_v1 = vld [vmem:[#allocation5 + $0xec] sm:$0xf0] }
  0x10   :  { %v638_v2 = vld [vmem:[#allocation5 + $0xe4] sm:$0xf]  ;;  %v593_v3 = vor.u32 %v640_v1, %v592_v0  ;;  %v594_v4 = vld [vmem:[#allocation5 + $0xf0] sm:$0xf0]  ;;  %v600_v5 = vld [vmem:[#allocation5 + $0xe8] sm:$0xf] }
  0x11   :  { %v641_v6 = vld [vmem:[#allocation5 + $0xf4] sm:$0xf0]  ;;  %v597_v7 = vor.u32 %v638_v2, %v594_v4  ;;  %v639_v9 = vld [vmem:[#allocation5 + $0xec] sm:$0xf]  ;;  %v602_v10 = vld [vmem:[#allocation5 + $0xf8] sm:$0xf0] }
  0x12   :  { %v601_v8 = vor.u32 %v641_v6, %v600_v5  ;;  %v576_v11 = vld [vmem:[#allocation5 + $0xc0] sm:$0xf]  ;;  %294 = vmatpush.bf16.msra.mxu0 %v593_v3  ;;  %v605_v12 = vor.u32 %v639_v9, %v602_v10  ;;  %v636_v13 = vld [vmem:[#allocation5 + $0xcc] sm:$0xf0]  ;;  %v634_v14 = vld [vmem:[#allocation5 + $0xc4] sm:$0xf] }
  0x13   :  { %v578_v15 = vld [vmem:[#allocation5 + $0xd0] sm:$0xf0]  ;;  %323 = vmatpush.bf16.msra.mxu1 %v597_v7  ;;  %v577_v16 = vor.u32 %v636_v13, %v576_v11  ;;  %v584_v18 = vld [vmem:[#allocation5 + $0xc8] sm:$0xf]  ;;  %v637_v19 = vld [vmem:[#allocation5 + $0xd4] sm:$0xf0] }
  0x14   :  { %352 = vmatpush.bf16.msra.mxu2 %v601_v8  ;;  %v581_v17 = vor.u32 %v634_v14, %v578_v15  ;;  %v635_v20 = vld [vmem:[#allocation5 + $0xcc] sm:$0xf]  ;;  %381 = vmatpush.bf16.msra.mxu3 %v605_v12  ;;  %v585_v21 = vor.u32 %v637_v19, %v584_v18  ;;  %v586_v22 = vld [vmem:[#allocation5 + $0xd8] sm:$0xf0]  ;;  %v560_v23 = vld [vmem:[#allocation5 + $0xa0] sm:$0xf] }
  0x15   :  { %v632_v24 = vld [vmem:[#allocation5 + $0xac] sm:$0xf0]  ;;  %v589_v25 = vor.u32 %v635_v20, %v586_v22  ;;  %v630_v26 = vld [vmem:[#allocation5 + $0xa4] sm:$0xf]  ;;  %v562_v27 = vld [vmem:[#allocation5 + $0xb0] sm:$0xf0] }
  0x16   :  { %v568_v28 = vld [vmem:[#allocation5 + $0xa8] sm:$0xf]  ;;  %295 = vmatpush.bf16.msra.mxu0 %v577_v16  ;;  %v561_v29 = vor.u32 %v632_v24, %v560_v23  ;;  %v633_v30 = vld [vmem:[#allocation5 + $0xb4] sm:$0xf0]  ;;  %v631_v31 = vld [vmem:[#allocation5 + $0xac] sm:$0xf]  ;;  %v565_v33 = vor.u32 %v630_v26, %v562_v27 }
  0x17   :  { %v570_v32 = vld [vmem:[#allocation5 + $0xb8] sm:$0xf0]  ;;  %324 = vmatpush.bf16.msra.mxu1 %v581_v17  ;;  %v569_v34 = vor.u32 %v633_v30, %v568_v28  ;;  %v544_v35 = vld [vmem:[#allocation5 + $0x80] sm:$0xf]  ;;  %v628_v36 = vld [vmem:[#allocation5 + $0x8c] sm:$0xf0] }
  0x18   :  { %353 = vmatpush.bf16.msra.mxu2 %v585_v21  ;;  %v626_v37 = vld [vmem:[#allocation5 + $0x84] sm:$0xf]  ;;  %382 = vmatpush.bf16.msra.mxu3 %v589_v25  ;;  %v573_v38 = vor.u32 %v631_v31, %v570_v32  ;;  %v546_v39 = vld [vmem:[#allocation5 + $0x90] sm:$0xf0]  ;;  %v552_v40 = vld [vmem:[#allocation5 + $0x88] sm:$0xf]  ;;  %v545_v44 = vor.u32 %v628_v36, %v544_v35 }
  0x19   :  { %v629_v41 = vld [vmem:[#allocation5 + $0x94] sm:$0xf0]  ;;  %v627_v42 = vld [vmem:[#allocation5 + $0x8c] sm:$0xf]  ;;  %v554_v43 = vld [vmem:[#allocation5 + $0x98] sm:$0xf0]  ;;  %v549_v45 = vor.u32 %v626_v37, %v546_v39 }
  0x1a   :  { %296 = vmatpush.bf16.msra.mxu0 %v561_v29  ;;  %v553_v46 = vor.u32 %v629_v41, %v552_v40  ;;  %v528_v47 = vld [vmem:[#allocation5 + $0x60] sm:$0xf]  ;;  %v624_v48 = vld [vmem:[#allocation5 + $0x6c] sm:$0xf0]  ;;  %v622_v49 = vld [vmem:[#allocation5 + $0x64] sm:$0xf]  ;;  %v557_v50 = vor.u32 %v627_v42, %v554_v43 }
  0x1b   :  { %325 = vmatpush.bf16.msra.mxu1 %v565_v33  ;;  %v530_v51 = vld [vmem:[#allocation5 + $0x70] sm:$0xf0]  ;;  %v536_v52 = vld [vmem:[#allocation5 + $0x68] sm:$0xf]  ;;  %v625_v53 = vld [vmem:[#allocation5 + $0x74] sm:$0xf0]  ;;  %v529_v56 = vor.u32 %v624_v48, %v528_v47 }
  0x1c   :  { %354 = vmatpush.bf16.msra.mxu2 %v569_v34  ;;  %383 = vmatpush.bf16.msra.mxu3 %v573_v38  ;;  %v623_v54 = vld [vmem:[#allocation5 + $0x6c] sm:$0xf]  ;;  %v538_v55 = vld [vmem:[#allocation5 + $0x78] sm:$0xf0]  ;;  %v533_v57 = vor.u32 %v622_v49, %v530_v51  ;;  %v537_v58 = vor.u32 %v625_v53, %v536_v52  ;;  %v512_v59 = vld [vmem:[#allocation5 + $0x40] sm:$0xf] }
  0x1d   :  { %v620_v60 = vld [vmem:[#allocation5 + $0x4c] sm:$0xf0]  ;;  %v618_v61 = vld [vmem:[#allocation5 + $0x44] sm:$0xf]  ;;  %v541_v62 = vor.u32 %v623_v54, %v538_v55  ;;  %v514_v63 = vld [vmem:[#allocation5 + $0x50] sm:$0xf0] }
  0x1e   :  { %297 = vmatpush.bf16.msra.mxu0 %v545_v44  ;;  %v520_v0 = vld [vmem:[#allocation5 + $0x48] sm:$0xf]  ;;  %v621_v1 = vld [vmem:[#allocation5 + $0x54] sm:$0xf0]  ;;  %v619_v2 = vld [vmem:[#allocation5 + $0x4c] sm:$0xf]  ;;  %v513_v4 = vor.u32 %v620_v60, %v512_v59  ;;  %v517_v5 = vor.u32 %v618_v61, %v514_v63 }
  0x1f   :  { %326 = vmatpush.bf16.msra.mxu1 %v549_v45  ;;  %v522_v3 = vld [vmem:[#allocation5 + $0x58] sm:$0xf0]  ;;  %v521_v6 = vor.u32 %v621_v1, %v520_v0  ;;  %v496_v7 = vld [vmem:[#allocation5 + $0x20] sm:$0xf]  ;;  %v616_v8 = vld [vmem:[#allocation5 + $0x2c] sm:$0xf0] }
  0x20   :  { %355 = vmatpush.bf16.msra.mxu2 %v553_v46  ;;  %384 = vmatpush.bf16.msra.mxu3 %v557_v50  ;;  %v614_v9 = vld [vmem:[#allocation5 + $0x24] sm:$0xf]  ;;  %v525_v10 = vor.u32 %v619_v2, %v522_v3  ;;  %v498_v11 = vld [vmem:[#allocation5 + $0x30] sm:$0xf0]  ;;  %v504_v12 = vld [vmem:[#allocation5 + $0x28] sm:$0xf]  ;;  %v497_v16 = vor.u32 %v616_v8, %v496_v7 }
  0x21   :  { %v617_v13 = vld [vmem:[#allocation5 + $0x34] sm:$0xf0]  ;;  %v615_v14 = vld [vmem:[#allocation5 + $0x2c] sm:$0xf]  ;;  %v506_v15 = vld [vmem:[#allocation5 + $0x38] sm:$0xf0]  ;;  %v501_v17 = vor.u32 %v614_v9, %v498_v11 }
  0x22   :  { %298 = vmatpush.bf16.msra.mxu0 %v529_v56  ;;  %v505_v18 = vor.u32 %v617_v13, %v504_v12  ;;  %v480_v19 = vld [vmem:[#allocation5] sm:$0xf]  ;;  %v612_v20 = vld [vmem:[#allocation5 + $0xc] sm:$0xf0]  ;;  %v610_v21 = vld [vmem:[#allocation5 + $0x4] sm:$0xf]  ;;  %v509_v22 = vor.u32 %v615_v14, %v506_v15 }
  0x23   :  { %327 = vmatpush.bf16.msra.mxu1 %v533_v57  ;;  %v482_v23 = vld [vmem:[#allocation5 + $0x10] sm:$0xf0]  ;;  %v488_v24 = vld [vmem:[#allocation5 + $0x8] sm:$0xf]  ;;  %v613_v25 = vld [vmem:[#allocation5 + $0x14] sm:$0xf0]  ;;  %v481_v28 = vor.u32 %v612_v20, %v480_v19 }
  0x24   :  { %356 = vmatpush.bf16.msra.mxu2 %v537_v58  ;;  %385 = vmatpush.bf16.msra.mxu3 %v541_v62  ;;  %v611_v26 = vld [vmem:[#allocation5 + $0xc] sm:$0xf]  ;;  %v490_v27 = vld [vmem:[#allocation5 + $0x18] sm:$0xf0]  ;;  %v485_v29 = vor.u32 %v610_v21, %v482_v23  ;;  %v489_v30 = vor.u32 %v613_v25, %v488_v24  ;;  %v606_v32 = vld [vmem:[#allocation2] sm:$0xff]  ;;  %s759_s2 = smov [#allocation8]  }
  0x25   :  { %v493_v31 = vor.u32 %v611_v26, %v490_v27  ;;  %v607_v33 = vld [vmem:[#allocation2 + $0x8] sm:$0xff]  ;;  %v608_v34 = vld [vmem:[#allocation2 + $0x10] sm:$0xff]  ;;  %v609_v35 = vld [vmem:[#allocation2 + $0x18] sm:$0xff]  ;;  %s446_s29 = sshll.u32 %s759_s2, 4  ;;  %s448_s5 = sshll.u32 %s841_s3, 4  ;;  %s447_s29 = int_to_ptr.vmem [resolvable:$true] %s446_s29  ;;  %s449_s5 = int_to_ptr.hbm [resolvable:$true] %s448_s5 }
  0x26   :  { %299 = vmatpush.bf16.msra.mxu0 %v513_v4  ;;  %v100_v36 = vld [vmem:[#allocation7] sm:$0xf] }
  0x27   :  { %328 = vmatpush.bf16.msra.mxu1 %v517_v5  ;;  %v792_v37 = vperm.slane %v100_v36, 0  ;;  %v794_v38 = vperm.slane %v100_v36, 1  ;;  %v798_v44 = vperm.slane %v100_v36, 2  ;;  %v800_v45 = vperm.slane %v100_v36, 3 }
  0x28   :  { %357 = vmatpush.bf16.msra.mxu2 %v521_v6  ;;  %386 = vmatpush.bf16.msra.mxu3 %v525_v10 }
  0x2a   :  { %300 = vmatpush.bf16.msra.mxu0 %v497_v16 }
  0x2b   :  { %329 = vmatpush.bf16.msra.mxu1 %v501_v17 }
  0x2c   :  { %358 = vmatpush.bf16.msra.mxu2 %v505_v18  ;;  %387 = vmatpush.bf16.msra.mxu3 %v509_v22 }
  0x2e   :  { %301 = vmatpush.bf16.msra.mxu0 %v481_v28 }
  0x2f   :  { %330 = vmatpush.bf16.msra.mxu1 %v485_v29 }
  0x30   :  { %359 = vmatpush.bf16.msra.mxu2 %v489_v30  ;;  %388 = vmatpush.bf16.msra.mxu3 %v493_v31 }
  0x31   :  { %302 = vmatmul.bf16.vlgmr.msra.gmra.mxu0 %v606_v32 }
  0x32   :  { %331 = vmatmul.bf16.vlgmr.msra.gmra.mxu1 %v606_v32 }
  0x33   :  { %360 = vmatmul.bf16.vlgmr.msra.gmra.mxu2 %v606_v32  ;;  %389 = vmatmul.bf16.vlgmr.msra.gmra.mxu3 %v606_v32 }
  0x41   :  { %307 = vmatmul.bf16.gmra.mxu0 %v607_v33 }
  0x42   :  { %336 = vmatmul.bf16.gmra.mxu1 %v607_v33 }
  0x43   :  { %365 = vmatmul.bf16.gmra.mxu2 %v607_v33  ;;  %394 = vmatmul.bf16.gmra.mxu3 %v607_v33 }
  0x51   :  { %312 = vmatmul.bf16.gmra.mxu0 %v608_v34 }
  0x52   :  { %341 = vmatmul.bf16.gmra.mxu1 %v608_v34 }
  0x53   :  { %370 = vmatmul.bf16.gmra.mxu2 %v608_v34  ;;  %399 = vmatmul.bf16.gmra.mxu3 %v608_v34 }
  0x61   :  { %317 = vmatmul.bf16.gmra.mxu0 %v609_v35 }
  0x62   :  { %346 = vmatmul.bf16.gmra.mxu1 %v609_v35 }
  0x63   :  { %375 = vmatmul.bf16.gmra.mxu2 %v609_v35  ;;  %404 = vmatmul.bf16.gmra.mxu3 %v609_v35 }
  0xae   :  { %v303_v39 = vpop.f32.mrf.mxu0 }
  0xaf   :  { %v304_v40 = vadd.f32 %v303_v39, %v792_v37  ;;  %v332_v41 = vpop.f32.mrf.mxu1 }
  0xb0   :  { %v333_v42 = vadd.f32 %v332_v41, %v794_v38 }
  0xb2   :  { %v410_v43 = vpack.c.bf16 %v333_v42, %v304_v40 }
  0xb4   :  { %426 = vst [vmem:[#allocation8] sm:$0xff] %v410_v43 }
  0xb6   :  { %v361_v46 = vpop.f32.mrf.mxu2  ;;  %v390_v48 = vpop.f32.mrf.mxu3 }
  0xb7   :  { %v362_v47 = vadd.f32 %v361_v46, %v798_v44  ;;  %v305_v49 = vpop.f32.mrf.mxu0  ;;  %v391_v50 = vadd.f32 %v390_v48, %v800_v45  ;;  %v334_v52 = vpop.f32.mrf.mxu1 }
  0xb8   :  { %v306_v51 = vadd.f32 %v305_v49, %v792_v37  ;;  %v335_v53 = vadd.f32 %v334_v52, %v794_v38 }
  0xb9   :  { %v411_v54 = vpack.c.bf16 %v391_v50, %v362_v47 }
  0xba   :  { %v412_v55 = vpack.c.bf16 %v335_v53, %v306_v51 }
  0xbb   :  { %427 = vst [vmem:[#allocation8 + $0x8] sm:$0xff] %v411_v54 }
  0xbc   :  { %428 = vst [vmem:[#allocation8 + $0x10] sm:$0xff] %v412_v55 }
  0xbe   :  { %v363_v56 = vpop.f32.mrf.mxu2  ;;  %v392_v58 = vpop.f32.mrf.mxu3 }
  0xbf   :  { %v364_v57 = vadd.f32 %v363_v56, %v798_v44  ;;  %v308_v59 = vpop.f32.mrf.mxu0  ;;  %v393_v60 = vadd.f32 %v392_v58, %v800_v45  ;;  %v337_v62 = vpop.f32.mrf.mxu1 }
  0xc0   :  { %v309_v61 = vadd.f32 %v308_v59, %v792_v37  ;;  %v338_v63 = vadd.f32 %v337_v62, %v794_v38 }
  0xc1   :  { %v413_v0 = vpack.c.bf16 %v393_v60, %v364_v57 }
  0xc2   :  { %v414_v1 = vpack.c.bf16 %v338_v63, %v309_v61 }
  0xc3   :  { %429 = vst [vmem:[#allocation8 + $0x18] sm:$0xff] %v413_v0 }
  0xc4   :  { %430 = vst [vmem:[#allocation8 + $0x20] sm:$0xff] %v414_v1 }
  0xc6   :  { %v366_v2 = vpop.f32.mrf.mxu2  ;;  %v395_v4 = vpop.f32.mrf.mxu3 }
  0xc7   :  { %v367_v3 = vadd.f32 %v366_v2, %v798_v44  ;;  %v310_v5 = vpop.f32.mrf.mxu0  ;;  %v396_v6 = vadd.f32 %v395_v4, %v800_v45  ;;  %v339_v8 = vpop.f32.mrf.mxu1 }
  0xc8   :  { %v311_v7 = vadd.f32 %v310_v5, %v792_v37  ;;  %v340_v9 = vadd.f32 %v339_v8, %v794_v38 }
  0xc9   :  { %v415_v10 = vpack.c.bf16 %v396_v6, %v367_v3 }
  0xca   :  { %v416_v11 = vpack.c.bf16 %v340_v9, %v311_v7 }
  0xcb   :  { %431 = vst [vmem:[#allocation8 + $0x28] sm:$0xff] %v415_v10 }
  0xcc   :  { %432 = vst [vmem:[#allocation8 + $0x30] sm:$0xff] %v416_v11 }
  0xce   :  { %v368_v12 = vpop.f32.mrf.mxu2  ;;  %v397_v14 = vpop.f32.mrf.mxu3 }
  0xcf   :  { %v369_v13 = vadd.f32 %v368_v12, %v798_v44  ;;  %v313_v15 = vpop.f32.mrf.mxu0  ;;  %v398_v16 = vadd.f32 %v397_v14, %v800_v45  ;;  %v342_v18 = vpop.f32.mrf.mxu1 }
  0xd0   :  { %v314_v17 = vadd.f32 %v313_v15, %v792_v37  ;;  %v343_v19 = vadd.f32 %v342_v18, %v794_v38 }
  0xd1   :  { %v417_v20 = vpack.c.bf16 %v398_v16, %v369_v13 }
  0xd2   :  { %v418_v21 = vpack.c.bf16 %v343_v19, %v314_v17 }
  0xd3   :  { %433 = vst [vmem:[#allocation8 + $0x38] sm:$0xff] %v417_v20 }
  0xd4   :  { %434 = vst [vmem:[#allocation8 + $0x40] sm:$0xff] %v418_v21 }
  0xd6   :  { %v371_v22 = vpop.f32.mrf.mxu2  ;;  %v400_v24 = vpop.f32.mrf.mxu3 }
  0xd7   :  { %v372_v23 = vadd.f32 %v371_v22, %v798_v44  ;;  %v315_v25 = vpop.f32.mrf.mxu0  ;;  %v401_v26 = vadd.f32 %v400_v24, %v800_v45  ;;  %v344_v28 = vpop.f32.mrf.mxu1 }
  0xd8   :  { %v316_v27 = vadd.f32 %v315_v25, %v792_v37  ;;  %v345_v29 = vadd.f32 %v344_v28, %v794_v38 }
  0xd9   :  { %v419_v30 = vpack.c.bf16 %v401_v26, %v372_v23 }
  0xda   :  { %v420_v31 = vpack.c.bf16 %v345_v29, %v316_v27 }
  0xdb   :  { %435 = vst [vmem:[#allocation8 + $0x48] sm:$0xff] %v419_v30 }
  0xdc   :  { %436 = vst [vmem:[#allocation8 + $0x50] sm:$0xff] %v420_v31 }
  0xde   :  { %v373_v32 = vpop.f32.mrf.mxu2  ;;  %v402_v34 = vpop.f32.mrf.mxu3 }
  0xdf   :  { %v374_v33 = vadd.f32 %v373_v32, %v798_v44  ;;  %v318_v35 = vpop.f32.mrf.mxu0  ;;  %v403_v36 = vadd.f32 %v402_v34, %v800_v45  ;;  %v347_v40 = vpop.f32.mrf.mxu1 }
  0xe0   :  { %v319_v39 = vadd.f32 %v318_v35, %v792_v37  ;;  %v348_v41 = vadd.f32 %v347_v40, %v794_v38 }
  0xe1   :  { %v421_v42 = vpack.c.bf16 %v403_v36, %v374_v33 }
  0xe2   :  { %v422_v43 = vpack.c.bf16 %v348_v41, %v319_v39 }
  0xe3   :  { %437 = vst [vmem:[#allocation8 + $0x58] sm:$0xff] %v421_v42 }
  0xe4   :  { %438 = vst [vmem:[#allocation8 + $0x60] sm:$0xff] %v422_v43 }
  0xe6   :  { %v376_v46 = vpop.f32.mrf.mxu2  ;;  %v405_v48 = vpop.f32.mrf.mxu3 }
  0xe7   :  { %v377_v47 = vadd.f32 %v376_v46, %v798_v44  ;;  %v320_v49 = vpop.f32.mrf.mxu0  ;;  %v406_v50 = vadd.f32 %v405_v48, %v800_v45  ;;  %v349_v52 = vpop.f32.mrf.mxu1 }
  0xe8   :  { %v321_v51 = vadd.f32 %v320_v49, %v792_v37  ;;  %v350_v53 = vadd.f32 %v349_v52, %v794_v38 }
  0xe9   :  { %v423_v54 = vpack.c.bf16 %v406_v50, %v377_v47 }
  0xea   :  { %v424_v55 = vpack.c.bf16 %v350_v53, %v321_v51 }
  0xeb   :  { %439 = vst [vmem:[#allocation8 + $0x68] sm:$0xff] %v423_v54 }
  0xec   :  { %440 = vst [vmem:[#allocation8 + $0x70] sm:$0xff] %v424_v55 }
  0xee   :  { %v378_v56 = vpop.f32.mrf.mxu2  ;;  %v407_v58 = vpop.f32.mrf.mxu3 }
  0xef   :  { %v379_v57 = vadd.f32 %v378_v56, %v798_v44  ;;  %v408_v59 = vadd.f32 %v407_v58, %v800_v45 }
  0xf1   :  { %v425_v37 = vpack.c.bf16 %v408_v59, %v379_v57 }
  0xf3   :  { %441 = vst [vmem:[#allocation8 + $0x78] sm:$0xff] %v425_v37 }
  0xf4   :  { %454 = dma.vmem_to_hbm [thread:$0]  %s447_s29, 2048, %s449_s5, [#allocation4], %s753_s20, %s753_s20, %s754_s21  }
  0xf5   :  { %750 = dma.done.wait [#allocation4], 2048  }
  0xf6   :  { %751 = vsyncadd [#allocation4], 4294965248 }
  0xf7   :  { %459 = vsyncpa [#allocation3], 1 }
  0xf8   :  { %460 = vsyncpa [#allocation6], 1 }
  0xf9   :  { %461 = vsyncpa [#allocation4], 1 }

</bundles_post_ra>
